<compile_context>
chip_gen: v6e
topology: v6e:2x2x1
jax: 0.10.0
libtpu: 0.0.40
codegen_flags: <defaults>
</compile_context>

<pallas_src>
import jax
import jax.numpy as jnp
from jax.experimental import pallas as pl
from jax.experimental.pallas import tpu as pltpu


def _edge_mlp_kernel(x_ref, bidx_ref, w1t_ref, uwbT_ref, w2t_ref, b2t_ref, o_ref):
    """One tile of edges, feature-major (edges on the lane axis).

    x_ref    : [2*node_in + edge_in, TE]  streamed  (src^T | dest^T | edge_attr^T)
    bidx_ref : [1, TE]                    streamed  int32 graph id per edge
    w1t_ref  : [hid, 2*node_in + edge_in] resident
    uwbT_ref : [hid, B]                   resident  ((u @ w1d + b1).T, bias folded)
    w2t_ref  : [f_out, hid]               resident
    b2t_ref  : [f_out, 1]                 resident
    o_ref    : [f_out, TE]                lane-dense output tile
    """
    f32 = jnp.float32

    x = x_ref[...]                                            # [f_nd, TE]

    # Fused first linear layer over the node/edge features: [hid, TE].
    h = jnp.dot(w1t_ref[...], x, preferred_element_type=f32)

    # u[batch] @ w1d + b1 gathered from the tiny resident uwbT via a one-hot
    # matmul built directly as [B, TE] (no cross-lane relayout needed).
    nb = uwbT_ref.shape[1]
    te = bidx_ref.shape[1]
    one_hot = (jax.lax.broadcasted_iota(jnp.int32, (nb, te), 0)
               == bidx_ref[...]).astype(f32)                  # [B, TE]
    h = h + jnp.dot(uwbT_ref[...], one_hot, preferred_element_type=f32)

    h = jnp.maximum(h, 0.0)                                   # ReLU (b1 already folded)
    y = jnp.dot(w2t_ref[...], h, preferred_element_type=f32) + b2t_ref[...]

    # residuals=True: edge_attr is the trailing f_out rows of the streamed tile.
    f_out = o_ref.shape[0]
    ea = x[x.shape[0] - f_out:, :]
    o_ref[...] = (y + ea).astype(o_ref.dtype)


def _pick_vmem_limit_bytes():
    # Per-generation budget: ~3/4 of physical VMEM (v7x only has 64 MiB per TC,
    # v5e/v6e have 128 MiB). Conservative fallback if the query is unavailable.
    try:
        cap = int(pltpu.get_tpu_info().vmem_capacity_bytes)
        return max(32 << 20, min((cap * 3) // 4, 100 << 20))
    except Exception:
        return 48 << 20


def edge_model_forward(src, dest, edge_attr, u, batch, params, *, block_edges=8192):
    """Pallas-backed forward pass of EdgeModel (residuals=True, norm=False)."""
    f32 = jnp.float32
    w1 = params["w1"].astype(f32)
    b1 = params["b1"].astype(f32)
    w2 = params["w2"].astype(f32)
    b2 = params["b2"].astype(f32)

    node_in = src.shape[1]
    edge_in = edge_attr.shape[1]
    global_in = u.shape[1]
    hid = w1.shape[1]
    f_out = w2.shape[1]
    feat_nd = 2 * node_in + edge_in
    f_in = feat_nd + global_in
    assert w1.shape[0] == f_in, "w1 rows must equal 2*node_in + edge_in + global_in"
    # residuals=True silently requires edge_in == edge_out — make it loud.
    assert edge_in == f_out, "residual connection requires edge_in == edge_out"

    E = src.shape[0]
    B = u.shape[0]

    # Edge tile lives on the lane axis -> multiple of 128. Sized by block_edges
    # (sweep knob); default 8192 since lane-packed tiles are only a few MiB.
    te = max(128, (int(block_edges) // 128) * 128)
    e_pad = ((E + te - 1) // te) * te
    grid = (e_pad // te,)

    # Wrapper-side layout plumbing: one packed, feature-major streamed array.
    x = jnp.concatenate([src, dest, edge_attr], axis=1).astype(f32)   # [E, feat_nd]
    if e_pad != E:
        x = jnp.pad(x, ((0, e_pad - E), (0, 0)))
    x_t = x.T                                                         # [feat_nd, e_pad]

    batch_i32 = batch.astype(jnp.int32)
    if e_pad != E:
        # Pad with graph 0 (valid index); padded columns are discarded below.
        batch_i32 = jnp.pad(batch_i32, (0, e_pad - E))
    batch_row = batch_i32.reshape(1, e_pad)                           # lane-dense indices

    # Fused / hoisted weights. b1 is folded into uwb (each edge hits exactly one
    # one-hot entry), so the kernel never adds b1 separately.
    w1t = w1[:feat_nd].T                                              # [hid, feat_nd]
    w1d = w1[feat_nd:]                                                # [global_in, hid]
    uwbT = (u.astype(f32) @ w1d + b1.reshape(1, hid)).T               # [hid, B]
    w2t = w2.T                                                        # [f_out, hid]
    b2t = b2.reshape(f_out, 1)                                        # [f_out, 1]

    def streamed(nrows):
        return pl.BlockSpec((nrows, te), lambda i: (0, i))

    def resident(shape):
        return pl.BlockSpec(shape, lambda i: (0, 0))  # DMA'd once, stays in VMEM

    bytes_streamed = 4 * e_pad * (feat_nd + 1 + f_out)
    bytes_resident = 4 * (hid * feat_nd + hid * B + hid * f_out + f_out)
    cost = pl.CostEstimate(
        flops=2 * e_pad * (feat_nd * hid + B * hid + hid * f_out),
        transcendentals=0,
        bytes_accessed=bytes_streamed + bytes_resident,
    )

    out_t = pl.pallas_call(
        _edge_mlp_kernel,
        out_shape=jax.ShapeDtypeStruct((f_out, e_pad), jnp.float32),
        grid_spec=pltpu.PrefetchScalarGridSpec(
            num_scalar_prefetch=0,
            grid=grid,
            in_specs=[
                streamed(feat_nd),            # x_t  (src^T|dest^T|edge_attr^T), streamed
                streamed(1),                  # batch ids, streamed, lane-dense
                resident((hid, feat_nd)),     # w1t
                resident((hid, B)),           # uwbT (u @ w1d + b1, hoisted)
                resident((f_out, hid)),       # w2t
                resident((f_out, 1)),         # b2t
            ],
            out_specs=pl.BlockSpec((f_out, te), lambda i: (0, i)),    # lane-dense out
        ),
        compiler_params=pltpu.CompilerParams(
            dimension_semantics=("parallel",),      # shard edge tiles across TCs
            vmem_limit_bytes=_pick_vmem_limit_bytes(),
        ),
        cost_estimate=cost,
    )(x_t, batch_row, w1t, uwbT, w2t, b2t)

    # Back to the module's [E, f_out] layout (cheap XLA transpose outside kernel).
    return out_t[:, :E].T


def init_params(key, node_in, edge_in, global_in, edge_out, hid_channels):
    f_in = node_in * 2 + edge_in + global_in
    k1, k2, k3, k4 = jax.random.split(key, 4)
    bound1 = 1.0 / jnp.sqrt(f_in)
    bound2 = 1.0 / jnp.sqrt(hid_channels)
    return {
        "w1": jax.random.uniform(k1, (f_in, hid_channels), jnp.float32, -bound1, bound1),
        "b1": jax.random.uniform(k2, (1, hid_channels), jnp.float32, -bound1, bound1),
        "w2": jax.random.uniform(k3, (hid_channels, edge_out), jnp.float32, -bound2, bound2),
        "b2": jax.random.uniform(k4, (1, edge_out), jnp.float32, -bound2, bound2),
    }


def _reference_forward(src, dest, edge_attr, u, batch, params):
    x = jnp.concatenate([src, dest, edge_attr, u[batch]], axis=1)
    h = jnp.maximum(x @ params["w1"] + params["b1"], 0.0)
    y = h @ params["w2"] + params["b2"]
    return y + edge_attr


if __name__ == "__main__":
    # Small shapes consistent with the module; E big enough to exercise the grid.
    node_in, edge_in, edge_out, global_in, hid = 4, 4, 4, 4, 32
    E, B = 256, 2
    TE = 128  # small demo tile; production default is 8192 (sweep)

    key = jax.random.PRNGKey(0)
    kp, ks, kd, ke, ku = jax.random.split(key, 5)

    params = init_params(kp, node_in, edge_in, global_in, edge_out, hid)

    src = jax.random.normal(ks, (E, node_in), jnp.float32)
    dest = jax.random.normal(kd, (E, node_in), jnp.float32)
    edge_attr = jax.random.normal(ke, (E, edge_in), jnp.float32)
    u = jax.random.normal(ku, (B, global_in), jnp.float32)
    batch = jnp.repeat(jnp.arange(B, dtype=jnp.int32), E // B)

    out = edge_model_forward(src, dest, edge_attr, u, batch, params, block_edges=TE)
    out = jax.block_until_ready(out)

    ref = _reference_forward(src, dest, edge_attr, u, batch, params)
    assert out.shape == (E, edge_out)
    err = float(jnp.max(jnp.abs(out - ref)))
    assert jnp.allclose(out, ref, atol=1e-4, rtol=1e-4), err

    print("KERNEL_OK")
</pallas_src>

<mosaic_0001>
module attributes {stable_mosaic.version = 11 : i64} {
  func.func @_edge_mlp_kernel(%arg0: i32, %arg1: memref<12x128xf32, #tpu.memory_space<vmem>>, %arg2: memref<1x128xi32, #tpu.memory_space<vmem>>, %arg3: memref<32x12xf32, #tpu.memory_space<vmem>>, %arg4: memref<32x2xf32, #tpu.memory_space<vmem>>, %arg5: memref<4x32xf32, #tpu.memory_space<vmem>>, %arg6: memref<4x1xf32, #tpu.memory_space<vmem>>, %arg7: memref<4x128xf32, #tpu.memory_space<vmem>>) attributes {dimension_semantics = [#tpu.dimension_semantics<parallel>], iteration_bounds = array<i64: 2>, scalar_prefetch = 0 : i64, scratch_operands = 0 : i64, tpu.core_type = #tpu.core_type<tc>, window_params = [{transform_indices = @transform_0, window_bounds = array<i64: 12, 128>}, {transform_indices = @transform_1, window_bounds = array<i64: 1, 128>}, {pipeline_mode = #tpu.pipeline_mode<synchronous>, transform_indices = @transform_2, window_bounds = array<i64: 32, 12>}, {pipeline_mode = #tpu.pipeline_mode<synchronous>, transform_indices = @transform_3, window_bounds = array<i64: 32, 2>}, {pipeline_mode = #tpu.pipeline_mode<synchronous>, transform_indices = @transform_4, window_bounds = array<i64: 4, 32>}, {pipeline_mode = #tpu.pipeline_mode<synchronous>, transform_indices = @transform_5, window_bounds = array<i64: 4, 1>}, {transform_indices = @transform_6, window_bounds = array<i64: 4, 128>}]} {
    %c0 = arith.constant 0 : index
    %c0_0 = arith.constant 0 : index
    %0 = vector.load %arg1[%c0, %c0_0] : memref<12x128xf32, #tpu.memory_space<vmem>>, vector<12x128xf32>
    %c0_1 = arith.constant 0 : index
    %c0_2 = arith.constant 0 : index
    %1 = vector.load %arg3[%c0_1, %c0_2] : memref<32x12xf32, #tpu.memory_space<vmem>>, vector<32x12xf32>
    %cst = arith.constant dense<0.000000e+00> : vector<32x128xf32>
    %2 = tpu.matmul %1, %0, %cst {dimension_numbers = #tpu.dot_dimension_numbers<[1], [0], [0], [1], [0, 0, 1, 1], [], []>} : vector<32x12xf32>, vector<12x128xf32>, vector<32x128xf32> -> vector<32x128xf32>
    %3 = tpu.iota {dimensions = array<i32: 0>} : vector<2x128xi32>
    %c0_3 = arith.constant 0 : index
    %c0_4 = arith.constant 0 : index
    %4 = vector.load %arg2[%c0_3, %c0_4] : memref<1x128xi32, #tpu.memory_space<vmem>>, vector<1x128xi32>
    %5 = vector.broadcast %4 : vector<1x128xi32> to vector<2x128xi32>
    %6 = arith.cmpi eq, %3, %5 : vector<2x128xi32>
    %7 = arith.extui %6 : vector<2x128xi1> to vector<2x128xi32>
    %8 = arith.sitofp %7 : vector<2x128xi32> to vector<2x128xf32>
    %c0_5 = arith.constant 0 : index
    %c0_6 = arith.constant 0 : index
    %9 = vector.load %arg4[%c0_5, %c0_6] : memref<32x2xf32, #tpu.memory_space<vmem>>, vector<32x2xf32>
    %cst_7 = arith.constant dense<0.000000e+00> : vector<32x128xf32>
    %10 = tpu.matmul %9, %8, %cst_7 {dimension_numbers = #tpu.dot_dimension_numbers<[1], [0], [0], [1], [0, 0, 1, 1], [], []>} : vector<32x2xf32>, vector<2x128xf32>, vector<32x128xf32> -> vector<32x128xf32>
    %11 = arith.addf %2, %10 : vector<32x128xf32>
    %cst_8 = arith.constant 0.000000e+00 : f32
    %12 = vector.broadcast %cst_8 : f32 to vector<32x128xf32>
    %13 = arith.maximumf %11, %12 : vector<32x128xf32>
    %c0_9 = arith.constant 0 : index
    %c0_10 = arith.constant 0 : index
    %14 = vector.load %arg5[%c0_9, %c0_10] : memref<4x32xf32, #tpu.memory_space<vmem>>, vector<4x32xf32>
    %cst_11 = arith.constant dense<0.000000e+00> : vector<4x128xf32>
    %15 = tpu.matmul %14, %13, %cst_11 {dimension_numbers = #tpu.dot_dimension_numbers<[1], [0], [0], [1], [0, 0, 1, 1], [], []>} : vector<4x32xf32>, vector<32x128xf32>, vector<4x128xf32> -> vector<4x128xf32>
    %c0_12 = arith.constant 0 : index
    %c0_13 = arith.constant 0 : index
    %16 = vector.load %arg6[%c0_12, %c0_13] : memref<4x1xf32, #tpu.memory_space<vmem>>, vector<4x1xf32>
    %17 = vector.broadcast %16 : vector<4x1xf32> to vector<4x128xf32>
    %18 = arith.addf %15, %17 : vector<4x128xf32>
    %19 = vector.extract_strided_slice %0 {offsets = [8, 0], sizes = [4, 128], strides = [1, 1]} : vector<12x128xf32> to vector<4x128xf32>
    %20 = arith.addf %18, %19 : vector<4x128xf32>
    %c0_14 = arith.constant 0 : index
    %c0_15 = arith.constant 0 : index
    %21 = vector.load %arg7[%c0_14, %c0_15] : memref<4x128xf32, #tpu.memory_space<vmem>>, vector<4x128xf32>
    tpu.vector_store %arg7[%c0_14, %c0_15], %20 {strides = array<i32>} : memref<4x128xf32, #tpu.memory_space<vmem>>, vector<4x128xf32>,
    return
  }
  func.func @transform_0(%arg0: i32) -> (i32, i32) {
    %c0_i32 = arith.constant 0 : i32
    %c0_i32_0 = arith.constant 0 : i32
    return %c0_i32, %arg0 : i32, i32
  }
  func.func @transform_1(%arg0: i32) -> (i32, i32) {
    %c0_i32 = arith.constant 0 : i32
    %c0_i32_0 = arith.constant 0 : i32
    return %c0_i32, %arg0 : i32, i32
  }
  func.func @transform_2(%arg0: i32) -> (i32, i32) {
    %c0_i32 = arith.constant 0 : i32
    %c0_i32_0 = arith.constant 0 : i32
    %c0_i32_1 = arith.constant 0 : i32
    return %c0_i32, %c0_i32_0 : i32, i32
  }
  func.func @transform_3(%arg0: i32) -> (i32, i32) {
    %c0_i32 = arith.constant 0 : i32
    %c0_i32_0 = arith.constant 0 : i32
    %c0_i32_1 = arith.constant 0 : i32
    return %c0_i32, %c0_i32_0 : i32, i32
  }
  func.func @transform_4(%arg0: i32) -> (i32, i32) {
    %c0_i32 = arith.constant 0 : i32
    %c0_i32_0 = arith.constant 0 : i32
    %c0_i32_1 = arith.constant 0 : i32
    return %c0_i32, %c0_i32_0 : i32, i32
  }
  func.func @transform_5(%arg0: i32) -> (i32, i32) {
    %c0_i32 = arith.constant 0 : i32
    %c0_i32_0 = arith.constant 0 : i32
    %c0_i32_1 = arith.constant 0 : i32
    return %c0_i32, %c0_i32_0 : i32, i32
  }
  func.func @transform_6(%arg0: i32) -> (i32, i32) {
    %c0_i32 = arith.constant 0 : i32
    %c0_i32_0 = arith.constant 0 : i32
    return %c0_i32, %arg0 : i32, i32
  }
}

</mosaic_0001>

<bundles_post_ra>
// kernel: tpu_custom_call.1
= control target key start
LH: loop header
LB: loop body
LE: loop exit
PB: predicated region body
PF: predicated region fallthrough
CT: control target
= control target key end

     0   :  { %11 = vsyncpa [#allocation4], 0  ;;  %s1061_s0 = inlined_call_operand.vmem [shape: f32[12,256], index: 0, kind: input, shape index: {}]   ;;  %s1062_s1 = inlined_call_operand.vmem [shape: s32[1,256], index: 1, kind: input, shape index: {}]   ;;  %s1063_s2 = inlined_call_operand.vmem [shape: f32[32,12], index: 2, kind: input, shape index: {}]   ;;  %s1064_s3 = inlined_call_operand.vmem [shape: f32[32,2], index: 3, kind: input, shape index: {}]   ;;  %s1065_s4 = inlined_call_operand.vmem [shape: f32[4,32], index: 4, kind: input, shape index: {}]   ;;  %s1066_s5 = inlined_call_operand.vmem [shape: f32[4,1], index: 5, kind: input, shape index: {}]   ;;  %s1067_s6 = inlined_call_operand.hbm [shape: f32[4,256], index: 6, kind: output, shape index: {}]  }
   0x1   :  { %13 = vsyncpa [#allocation4 + $0x1], 0  ;;  %s916_s21 = smov 0   ;;  %s918_s22 = smov 0  }
   0x2   :  { %s920_s23 = smov 0   ;;  %s922_s24 = smov 0  }
   0x3 LB: > { %s937_s25 = sadd.s32 4294967295, %s875_s24   ;;  %s702_s26 = sadd.s32 4294967294, %s875_s24   ;;  %s875_s24 = sphi %s922_s24, %s1075_s24   ;;  %s871_s23 = sphi %s920_s23, %s1074_s23   ;;  %s867_s22 = sphi %s918_s22, %s1073_s22   ;;  %s863_s21 = sphi %s916_s21, %s1072_s21  }
   0x4   : > { %s941_s27 = sadd.s32 1, %s875_s24   ;;  %s26_s28 = sadd.s32 1, %s871_s23 }
   0x5   : > { %s23_s29 = ssub.s32 %s875_s24, %s941_s27  ;;  %p33_p0 = scmp.ne.s32.totalorder %s871_s23, %s867_s22 }
   0x6   : > { %p24_p1 = scmp.eq.s32.totalorder %s23_s29, 0  ;;  %p34_p2 = scmp.eq.s32.totalorder %s875_s24, 0 }
   0x7   : > { %p173_p3 = scmp.eq.s32.totalorder %s937_s25, 1  ;;  %p178_p4 = scmp.ne.s32.totalorder %s867_s22, %s863_s21 }
   0x8   : > { %s953_s30 = scalar_select %p24_p1, %s871_s23, %s26_s28  }
   0x9   : > { %p35_p5 = por %p34_p2, %p33_p0  ;;  %p955_p6 = por %p173_p3, %p33_p0 }
   0xa   : > { %p179_p7 = scmp.eq.s32.totalorder %s702_s26, 1  ;;  %p1068_p9 = scmp.ge.s32.totalorder %s875_s24, 2 }
   0xc   : > { %p959_p8 = por %p179_p7, %p178_p4  ;;  %207 = sbr.rel (%p1068_p9) target bundleno = 22 (0x16), region = 32 }
  0x11   : > { %210 = sbr.rel (!%p35_p5) target bundleno = 22 (0x16), region = 36  ;;  %s212_s9 = sand.u32 (%p35_p5), 1, %s871_s23  }
  0x12   : > { %s706_s10 = sshll.u32 (%p35_p5), %s875_s24, 3  ;;  %s705_s11 = sshll.u32 (%p35_p5), %s212_s9, 4 }
  0x13   : > { %s216_s14 = scalar_lea.vmem (%p35_p5), %s1061_s0, %s706_s10  ;;  %s214_s15 = scalar_lea.vmem (%p35_p5), [#allocation2], %s705_s11 }
  0x14   : > { %v247_v0 = vld [vmem:[%s216_s14] sm:$0xff] (%p35_p5)  ;;  %v249_v1 = vld [vmem:[%s216_s14 + $0x10] sm:$0xff] (%p35_p5) }
  0x15   : > { %248 = vst [vmem:[%s214_s15] sm:$0xff] (%p35_p5), %v247_v0  ;;  %250 = vst [vmem:[%s214_s15 + $0x8] sm:$0xff] (%p35_p5), %v249_v1 }
  0x16 PF: > { %p707_p10 = scmp.ge.s32.totalorder %s875_s24, 1  ;;  %p261_p11 = scmp.lt.s32.totalorder %s875_s24, 3 }
  0x18   : > { %p262_p12 = pnand %p707_p10, %p261_p11 }
  0x19   : > { %s974_s16 = sand.u32 (!%p262_p12), 1, %s867_s22   ;;  %p300_p13 = scmp.lt.s32.totalorder (!%p262_p12), %s937_s25, 1 }
  0x1a   : > { %265 = sbr.rel (%p262_p12) target bundleno = 458 (0x1ca), region = 78  ;;  %s708_s19 = sshll.u32 (!%p262_p12), %s974_s16, 4 }
  0x1b   : > { %s270_s28 = scalar_lea.vmem (!%p262_p12), [#allocation2], %s708_s19  ;;  %s709_s14 = sshll.u32 (!%p262_p12), %s974_s16, 2 }
  0x1c   : > { %s724_s15 = sshll.u32 (!%p262_p12), %s937_s25, 6  ;;  %s299_s17 = scalar_lea.vmem (!%p262_p12), [#allocation3], %s709_s14 }
  0x1d   : > { %s628_s18 = sshll.u32 (!%p262_p12), %s299_s17, 4  ;;  %s626_s26 = scalar_lea.hbm (!%p262_p12), %s1067_s6, %s724_s15  ;;  %s629_s18 = int_to_ptr.vmem [resolvable:$true] %s628_s18 }
  0x1e   : > { %s880_s9 = smov (!%p262_p12), [#allocation3]  }
  0x1f   : > { %v305_v2 = vld [vmem:[%s1063_s2] sm:$0xff]  ;;  %vm425_vm0 = vcmask 97280   ;;  %v309_v3 = vlaneseq  ;;  %vm438_vm1 = vcmask 1043456   ;;  %vm323_vm2 = vcmask 15360   ;;  %v986_v5 = vld [vmem:[%s270_s28 + $0x8] sm:$0xf] }
  0x20   : > { %755 = vmatprep.mubr.msk.f32.mxu1 %vm425_vm0, %v305_v2  ;;  %v319_v4 = vld [vmem:[%s1064_s3] sm:$0xff]  ;;  %s301_s29 = scalar_select %p300_p13, %s937_s25, 1  ;;  %751 = vmatprep.subr.msk.mxu1 %vm438_vm1, %v986_v5  ;;  %v306_v8 = vld [vmem:[%s1063_s2 + $0x8] sm:$0xff]  ;;  %vm336_vm3 = vcmask 1041408   ;;  %v307_v10 = vld [vmem:[%s1063_s2 + $0x10] sm:$0xff]  ;;  %v877_v11 = vmov 0.0  }
  0x21   : > { %745 = vmatprep.mubr.msk.f32.mxu0 %vm323_vm2, %v319_v4  ;;  %v303_v6 = vld [vmem:[%s270_s28] sm:$0xff]  ;;  %v310_v7 = vshrl.u32 %v309_v3, 7  ;;  %752 = vmatpush3.msk.msra.mxu1 %vm438_vm1, %v986_v5  ;;  %v320_v13 = vld [vmem:[%s1064_s3 + $0x8] sm:$0xff]  ;;  %v308_v14 = vld [vmem:[%s1063_s2 + $0x18] sm:$0xff]  ;;  %vm878_vm5 = vmmov 0   ;;  %v879_v18 = vmov 0  }
  0x22   : > { %s302_s11 = scalar_lea.vmem %s1062_s1, %s301_s29  ;;  %753 = vmatprep.subr.mxu1 %v303_v6  ;;  %v321_v15 = vld [vmem:[%s1064_s3 + $0x10] sm:$0xff]  ;;  %v322_v16 = vld [vmem:[%s1064_s3 + $0x18] sm:$0xff]  ;;  %v532_v17 = vld [vmem:[%s1066_s5] sm:$0xf]  ;;  %814 = vset.pattern.permute.xlu0 %v879_v18  ;;  %vm538_vm6 = vcmask 261120   ;;  %s615_s28 = scalar_lea.sflag [#allocation4], %s974_s16 }
  0x23   : > { %v710_v9 = vld [vmem:[%s302_s11] ss:$0 sm:$0xff]  ;;  %754 = vmatpush3.msra.mxu1 %v303_v6  ;;  %535 = vperm.xlu0 %814, %v532_v17   ;;  %s815_s29 = scalar_lea.vmem %s629_s18, 64  ;;  %s819_s25 = sshll.u32 %s880_s9, 4  ;;  %s820_s25 = int_to_ptr.vmem [resolvable:$false] %s819_s25 }
  0x24   : > { %vm316_vm4 = vcmp.eq.s32.totalorder %v310_v7, %v710_v9  ;;  %756 = vmatmul.mubr.msk.f32.vlgmr.msra.gmra.mxu1 %vm425_vm0, %v306_v8  ;;  %v531_v35 = vld [vmem:[%s1065_s4] sm:$0xf]  ;;  %p816_p0 = scmp.ne.s32.totalorder %s629_s18, %s815_s29  ;;  %s821_s10 = scalar_lea.vmem %s820_s25, 128 }
  0x25   : > { %v711_v12 = vsel %vm316_vm4, 1.0, %v877_v11  ;;  %758 = vmatprep.mubr.msk.f32.mxu1 %vm425_vm0, %v307_v10  ;;  %p822_p3 = scmp.lt.s32.totalorder %s629_s18, %s820_s25  ;;  %p823_p4 = scmp.lt.s32.totalorder %s821_s10, %s815_s29 }
  0x26   : > { %743 = vmatprep.subr.msk.mxu0 %vm336_vm3, %v711_v12  ;;  %p817_p1 = pnand %p816_p0, %p955_p6 }
  0x27   : > { %744 = vmatpush3.msk.msra.mxu0 %vm336_vm3, %v711_v12  ;;  %p824_p5 = por %p823_p4, %p822_p3 }
  0x28   : > { %746 = vmatmul.mubr.msk.f32.vlgmr.msra.gmra.mxu0 %vm323_vm2, %v320_v13  ;;  %761 = vmatprep.subr.mxu0 %v877_v11  ;;  %p818_p2 = pneg %p817_p1 }
  0x29   : > { %759 = vmatmul.mubr.msk.f32.gmra.mxu1 %vm425_vm0, %v308_v14  ;;  %748 = vmatprep.mubr.msk.f32.mxu0 %vm323_vm2, %v321_v15 }
  0x2a   : > { %p825_p7 = pnand %p824_p5, %p818_p2 }
  0x2c   : > { %749 = vmatmul.mubr.msk.f32.gmra.mxu0 %vm323_vm2, %v322_v16 }
  0x2d   : > { %769 = vmatprep.mubr.msk.f32.mxu0 %vm878_vm5, %v877_v11 }
  0x9e   : > { %v536_v36 = vpop.permute.xlu0 %535 }
  0xe4   : > { %v757_v19 = vpop.f32.mrf.mxu1 }
  0xe6   : > { %v508_v20 = vpop.f32.mrf.mxu1 }
  0xe8   : > { %v747_v21 = vpop.f32.mrf.mxu0 }
  0xe9   : > { %v760_v23 = vpop.f32.mrf.mxu1  ;;  %v514_v28 = vadd.f32 %v757_v19, %v747_v21 }
  0xea   : > { %v406_v22 = vpop.f32.mrf.mxu0 }
  0xeb   : > { %v518_v26 = vpop.f32.mrf.mxu1  ;;  %v509_v31 = vadd.f32 %v508_v20, %v406_v22  ;;  %v528_v33 = vmax.f32 %v514_v28, 0.0 }
  0xec   : > { %v750_v24 = vpop.f32.mrf.mxu0 }
  0xed   : > { %v524_v25 = vadd.f32 %v760_v23, %v750_v24  ;;  %v527_v34 = vmax.f32 %v509_v31, 0.0 }
  0xee   : > { %v416_v27 = vpop.f32.mrf.mxu0 }
  0xef   : > { %v530_v29 = vmax.f32 %v524_v25, 0.0  ;;  %v519_v30 = vadd.f32 %v518_v26, %v416_v27 }
  0xf1   : > { %v529_v32 = vmax.f32 %v519_v30, 0.0  ;;  %762 = vmatpush3.msra.mxu0 %v530_v29 }
  0xf2   : > { %763 = vmatprep.subr.mxu0 %v877_v11 }
  0xf3   : > { %764 = vmatpush3.msra.mxu0 %v529_v32 }
  0xf4   : > { %765 = vmatprep.subr.mxu0 %v877_v11 }
  0xf5   : > { %766 = vmatpush3.msra.mxu0 %v528_v33 }
  0xf6   : > { %767 = vmatprep.subr.mxu0 %v877_v11 }
  0xf7   : > { %768 = vmatpush3.msra.mxu0 %v527_v34 }
  0xf8   : > { %770 = vmatmul.mubr.msk.f32.vlgmr.msra.gmra.mxu0 %vm538_vm6, %v531_v35 }
 0x1b8   : > { %v608_v37 = vpop.f32.mrf.mxu0 }
 0x1b9   : > { %v609_v38 = vadd.f32 %v608_v37, %v536_v36 }
 0x1ba   : > { %v771_v39 = vpop.f32.mrf.mxu0 }
 0x1bb   : > { %v612_v40 = vadd.f32 %v609_v38, %v986_v5 }
 0x1bd   : > { %613 = vst [vmem:[%s299_s17] sm:$0xf] %v612_v40 }
 0x1be   : > { %828 = shalt.err (!%p825_p7)
}
 0x1bf   : > { %s829_s11 = scalar_lea.hbm %s626_s26, 64  ;;  %s833_s13 = scalar_lea.hbm %s1067_s6, 128 }
 0x1c0   : > { %p830_p10 = scmp.ne.s32.totalorder %s626_s26, %s829_s11  ;;  %p834_p13 = scmp.lt.s32.totalorder %s626_s26, %s1067_s6 }
 0x1c1   : > { %p835_p0 = scmp.lt.s32.totalorder %s833_s13, %s829_s11 }
 0x1c2   : > { %p831_p11 = pnand %p830_p10, %p955_p6 }
 0x1c3   : > { %p836_p1 = por %p835_p0, %p834_p13 }
 0x1c4   : > { %p832_p12 = pneg %p831_p11 }
 0x1c6   : > { %p837_p9 = pnand %p836_p1, %p832_p12 }
 0x1c8   : > { %840 = shalt.err (!%p837_p9)
}
 0x1c9   : > { %772 = dma.vmem_to_hbm [thread:$0]  (%p955_p6), %s629_s18, 64, %s626_s26, %s615_s28  }
 0x1ca PF: > { %s640_s17 = sand.u32 1, %s863_s21   ;;  %p1071_p2 = scmp.ge.s32.totalorder %s875_s24, 2 }
 0x1cb   : > { %s641_s19 = scalar_lea.sflag [#allocation4], %s640_s17 }
 0x1cc   : > { %p775_p3 = pnand %p1071_p2, %p959_p8 }
 0x1ce   : > { %p776_p4 = pneg %p775_p3 }
 0x1d0   : > { %858 = dma.done.wait (%p776_p4), %s641_s19, 64  }
 0x1d1   : > { %860 = vsyncadd (%p776_p4), %s641_s19, 4294967232  ;;  %p16_p9 = scmp.ge.s32.totalorder %s941_s27, 4   ;;  %s1072_s21 = smov %s867_s22 }
 0x1d2   : > { %s1073_s22 = smov %s871_s23  ;;  %s1074_s23 = smov %s953_s30 }
 0x1d3   : > { %s1075_s24 = smov %s941_s27  ;;  %18 = sbr.rel (!%p16_p9) target bundleno = 3 (0x3), region = 125 }
 0x1d8   :  { %646 = vsyncpa [#allocation4], 1 }
 0x1d9   :  { %648 = vsyncpa [#allocation4 + $0x1], 1 }

</bundles_post_ra>
